<compile_context>
chip_gen: v5e
topology: v5e:2x2
jax: 0.10.0
libtpu: 0.0.40
codegen_flags: <defaults>
</compile_context>

<pallas_src>
import functools

import jax
import jax.numpy as jnp
from jax.experimental import pallas as pl
from jax.experimental.pallas import tpu as pltpu


def _round_up(n: int, m: int) -> int:
    return ((n + m - 1) // m) * m


# ---------------------------------------------------------------------------
# Kernel
# ---------------------------------------------------------------------------
def _mlp_kernel(*refs, num_layers: int):
    # refs = (x_ref, w0, b0, w1, b1, ..., w_{L-1}, b_{L-1}, o_ref)
    x_ref = refs[0]
    o_ref = refs[-1]
    h = x_ref[...].astype(jnp.float32)
    for l in range(num_layers):
        w_ref = refs[1 + 2 * l]        # (K, N_pad)   compute dtype (bf16)
        b_ref = refs[2 + 2 * l]        # (1, N_pad)   f32
        # bf16 operands -> MXU, f32 accumulation.
        h = jnp.dot(h.astype(w_ref.dtype), w_ref[...],
                    preferred_element_type=jnp.float32)
        h = h + b_ref[...]
        if l < num_layers - 1:         # ReLU on hidden layers only
            h = jnp.maximum(h, 0.0)
    o_ref[...] = h.astype(o_ref.dtype)


# ---------------------------------------------------------------------------
# Wrapper / pallas_call plumbing
# ---------------------------------------------------------------------------
def _vmem_limit_bytes(tile_b, in_feat, out_pad, padded_params, single_buffer_weights):
    x_tile = tile_b * in_feat * 4
    out_tile = tile_b * out_pad * 4
    wb = sum(int(w.size) * w.dtype.itemsize + int(b.size) * b.dtype.itemsize
             for (w, b) in padded_params)
    w_factor = 1 if single_buffer_weights else 2
    max_feat = max([in_feat] + [w.shape[1] for (w, _) in padded_params])
    act = 2 * tile_b * max_feat * 4            # live f32 + bf16 activation copies
    need = 2 * x_tile + 2 * out_tile + w_factor * wb + act
    need = int(need * 1.5) + (4 << 20)         # headroom for Mosaic internal scratch
    cap = 48 << 20                              # ~75% of v7x's 64 MiB per-TC VMEM
    try:
        cap = int(pltpu.get_tpu_info().vmem_capacity_bytes * 0.75)
    except Exception:
        pass
    return max(min(need, cap), 16 << 20)


def mlp_forward_fused(x, padded_params, out_pad, tile_b):
    """x: (B, in_feat) f32 (B % tile_b == 0).  padded_params: [(w:(K,N_pad) bf16, b:(1,N_pad) f32)]."""
    b_total, in_feat = x.shape
    num_layers = len(padded_params)
    grid = (b_total // tile_b,)
    kernel = functools.partial(_mlp_kernel, num_layers=num_layers)

    wb_bytes = sum(int(w.size) * w.dtype.itemsize + int(b.size) * b.dtype.itemsize
                   for (w, b) in padded_params)
    cost = pl.CostEstimate(
        flops=2 * b_total * sum(w.shape[0] * w.shape[1] for (w, _) in padded_params),
        transcendentals=0,
        bytes_accessed=int(x.size) * x.dtype.itemsize + wb_bytes + b_total * out_pad * 4,
    )

    flat_args = [x]
    for (w_t, b) in padded_params:
        flat_args.append(w_t)
        flat_args.append(b)

    def _run(single_buffer_weights):
        in_specs = [pl.BlockSpec((tile_b, in_feat), lambda i: (i, 0))]
        for (w_t, b) in padded_params:
            # Weights / biases: full-array blocks, index_map (0,0) -> resident
            # in VMEM across all batch grid steps (DMA'd once).
            if single_buffer_weights:
                in_specs.append(pl.BlockSpec(w_t.shape, lambda i: (0, 0),
                                             pipeline_mode=pl.Buffered(1)))
                in_specs.append(pl.BlockSpec(b.shape, lambda i: (0, 0),
                                             pipeline_mode=pl.Buffered(1)))
            else:
                in_specs.append(pl.BlockSpec(w_t.shape, lambda i: (0, 0)))
                in_specs.append(pl.BlockSpec(b.shape, lambda i: (0, 0)))
        return pl.pallas_call(
            kernel,
            out_shape=jax.ShapeDtypeStruct((b_total, out_pad), jnp.float32),
            grid=grid,
            in_specs=in_specs,
            out_specs=pl.BlockSpec((tile_b, out_pad), lambda i: (i, 0)),
            compiler_params=pltpu.CompilerParams(
                dimension_semantics=("parallel",),    # batch axis -> both TCs on v7x
                vmem_limit_bytes=_vmem_limit_bytes(
                    tile_b, in_feat, out_pad, padded_params, single_buffer_weights),
            ),
            cost_estimate=cost,
        )(*flat_args)

    try:
        return _run(single_buffer_weights=True)
    except Exception:
        # pipeline_mode / Buffered(1) unsupported on this jax version: fall back
        # to default double-buffered resident weights.
        return _run(single_buffer_weights=False)


def _choose_batch_tiling(batch, cap, sublane):
    """Return (tile_b, padded_batch) minimising batch padding."""
    if batch <= cap:
        # Single tile covering the whole batch: a block dim equal to the full
        # array dim is always legal -> no batch padding, no extra HBM pass.
        return batch, batch
    best_t, best_pad = None, None
    t = cap - (cap % sublane)
    lo = max(sublane, t // 2)
    while t >= lo:
        pad = (-batch) % t
        if best_pad is None or pad < best_pad:
            best_t, best_pad = t, pad
            if pad == 0:
                break
        t -= sublane
    return best_t, batch + best_pad


# ---------------------------------------------------------------------------
# Module
# ---------------------------------------------------------------------------
class NeuralNetworkPallas:
    """JAX/Pallas port of EcoNAS NeuralNetwork (MLP with variable hidden layers).

    Weights are stored transposed as (in, out), cast to a bf16 compute dtype for
    the MXU, and zero-padded to 128-lane multiples on all non-input feature
    dims.  Init matches torch.nn.Linear: U(-1/sqrt(fan_in), +1/sqrt(fan_in)).
    """

    LANE = 128       # lane width: pad non-input feature dims to this
    SUBLANE = 8      # sublane granularity for large-batch tiles
    MAX_TILE_B = 1024

    def __init__(self, input_size, output_size, hidden_sizes, key,
                 compute_dtype=jnp.bfloat16):
        self.input_size = input_size
        self.output_size = output_size
        self.compute_dtype = compute_dtype

        sizes = [input_size] + list(hidden_sizes) + [output_size]
        self.params = []          # unpadded f32 (w_t:(in,out), b:(1,out)) — reference path
        self.padded_params = []   # padded (w_t:(K,N_pad) compute_dtype, b:(1,N_pad) f32) — kernel path
        for idx, (fan_in, fan_out) in enumerate(zip(sizes[:-1], sizes[1:])):
            key, kw, kb = jax.random.split(key, 3)
            bound = 1.0 / float(fan_in) ** 0.5
            w = jax.random.uniform(kw, (fan_out, fan_in), jnp.float32, -bound, bound)
            b = jax.random.uniform(kb, (fan_out,), jnp.float32, -bound, bound)
            w_t = w.T                          # (in, out)
            b2 = b.reshape(1, fan_out)
            self.params.append((w_t, b2))

            # Layer-0 K dim keeps its natural width (no input-feature padding);
            # every output feature dim is padded to 128 lanes (lane-dense).
            k_pad = fan_in if idx == 0 else _round_up(fan_in, self.LANE)
            n_pad = _round_up(fan_out, self.LANE)
            w_pad = (jnp.zeros((k_pad, n_pad), compute_dtype)
                     .at[:fan_in, :fan_out].set(w_t.astype(compute_dtype)))
            b_pad = jnp.zeros((1, n_pad), jnp.float32).at[:, :fan_out].set(b2)
            self.padded_params.append((w_pad, b_pad))

        self.out_pad = _round_up(output_size, self.LANE)

    def __call__(self, x):
        batch = x.shape[0]
        x = x.reshape(batch, self.input_size).astype(jnp.float32)

        tile_b, b_total = _choose_batch_tiling(batch, self.MAX_TILE_B, self.SUBLANE)
        if b_total != batch:
            x = jnp.pad(x, ((0, b_total - batch), (0, 0)))

        out = mlp_forward_fused(x, self.padded_params, self.out_pad, tile_b)
        return out[:batch, : self.output_size]


def _reference(model, x):
    """Pure-JAX f32 reference (unpadded params)."""
    x = x.reshape(x.shape[0], model.input_size).astype(jnp.float32)
    *hidden, last = model.params
    for (w_t, b) in hidden:
        x = jnp.maximum(x @ w_t + b, 0.0)
    w_t, b = last
    return x @ w_t + b


if __name__ == "__main__":
    key = jax.random.PRNGKey(0)
    k_in, k_model = jax.random.split(key)

    # Small, MNIST-flavoured shapes: batch=2, input flattened from (1, 8, 8) -> 64.
    batch, C, H, W = 2, 1, 8, 8
    input_size = C * H * W
    hidden_sizes = [32, 16]
    output_size = 10

    x = jax.random.normal(k_in, (batch, C, H, W), jnp.float32)

    model = NeuralNetworkPallas(input_size, output_size, hidden_sizes, k_model)
    out = model(x)
    out = jax.block_until_ready(out)

    ref = _reference(model, x)
    assert out.shape == (batch, output_size)
    # bf16 MXU operands with f32 accumulation vs f32 reference: relaxed tolerance.
    assert jnp.allclose(out, ref, atol=5e-2, rtol=5e-2), (
        f"max abs err = {jnp.max(jnp.abs(out - ref))}")
    print("KERNEL_OK")
</pallas_src>

<mosaic_0001>
module attributes {stable_mosaic.version = 11 : i64} {
  func.func @_mlp_kernel(%arg0: i32, %arg1: memref<2x64xf32, #tpu.memory_space<vmem>>, %arg2: memref<64x128xbf16, #tpu.memory_space<vmem>>, %arg3: memref<1x128xf32, #tpu.memory_space<vmem>>, %arg4: memref<128x128xbf16, #tpu.memory_space<vmem>>, %arg5: memref<1x128xf32, #tpu.memory_space<vmem>>, %arg6: memref<128x128xbf16, #tpu.memory_space<vmem>>, %arg7: memref<1x128xf32, #tpu.memory_space<vmem>>, %arg8: memref<2x128xf32, #tpu.memory_space<vmem>>) attributes {dimension_semantics = [#tpu.dimension_semantics<parallel>], iteration_bounds = array<i64: 1>, scalar_prefetch = 0 : i64, scratch_operands = 0 : i64, tpu.core_type = #tpu.core_type<tc>, window_params = [{transform_indices = @transform_0, window_bounds = array<i64: 2, 64>}, {pipeline_mode = #tpu.pipeline_mode<synchronous>, transform_indices = @transform_1, window_bounds = array<i64: 64, 128>}, {pipeline_mode = #tpu.pipeline_mode<synchronous>, transform_indices = @transform_2, window_bounds = array<i64: 1, 128>}, {pipeline_mode = #tpu.pipeline_mode<synchronous>, transform_indices = @transform_3, window_bounds = array<i64: 128, 128>}, {pipeline_mode = #tpu.pipeline_mode<synchronous>, transform_indices = @transform_4, window_bounds = array<i64: 1, 128>}, {pipeline_mode = #tpu.pipeline_mode<synchronous>, transform_indices = @transform_5, window_bounds = array<i64: 128, 128>}, {pipeline_mode = #tpu.pipeline_mode<synchronous>, transform_indices = @transform_6, window_bounds = array<i64: 1, 128>}, {transform_indices = @transform_7, window_bounds = array<i64: 2, 128>}]} {
    %c0 = arith.constant 0 : index
    %c0_0 = arith.constant 0 : index
    %0 = vector.load %arg1[%c0, %c0_0] : memref<2x64xf32, #tpu.memory_space<vmem>>, vector<2x64xf32>
    %1 = arith.truncf %0 : vector<2x64xf32> to vector<2x64xbf16>
    %c0_1 = arith.constant 0 : index
    %c0_2 = arith.constant 0 : index
    %2 = vector.load %arg2[%c0_1, %c0_2] : memref<64x128xbf16, #tpu.memory_space<vmem>>, vector<64x128xbf16>
    %cst = arith.constant dense<0.000000e+00> : vector<2x128xf32>
    %3 = tpu.matmul %1, %2, %cst {dimension_numbers = #tpu.dot_dimension_numbers<[1], [0], [0], [1], [0, 0, 1, 1], [], []>} : vector<2x64xbf16>, vector<64x128xbf16>, vector<2x128xf32> -> vector<2x128xf32>
    %c0_3 = arith.constant 0 : index
    %c0_4 = arith.constant 0 : index
    %4 = vector.load %arg3[%c0_3, %c0_4] : memref<1x128xf32, #tpu.memory_space<vmem>>, vector<1x128xf32>
    %5 = vector.broadcast %4 : vector<1x128xf32> to vector<2x128xf32>
    %6 = arith.addf %3, %5 : vector<2x128xf32>
    %cst_5 = arith.constant 0.000000e+00 : f32
    %7 = vector.broadcast %cst_5 : f32 to vector<2x128xf32>
    %8 = arith.maximumf %6, %7 : vector<2x128xf32>
    %9 = arith.truncf %8 : vector<2x128xf32> to vector<2x128xbf16>
    %c0_6 = arith.constant 0 : index
    %c0_7 = arith.constant 0 : index
    %10 = vector.load %arg4[%c0_6, %c0_7] : memref<128x128xbf16, #tpu.memory_space<vmem>>, vector<128x128xbf16>
    %cst_8 = arith.constant dense<0.000000e+00> : vector<2x128xf32>
    %11 = tpu.matmul %9, %10, %cst_8 {dimension_numbers = #tpu.dot_dimension_numbers<[1], [0], [0], [1], [0, 0, 1, 1], [], []>} : vector<2x128xbf16>, vector<128x128xbf16>, vector<2x128xf32> -> vector<2x128xf32>
    %c0_9 = arith.constant 0 : index
    %c0_10 = arith.constant 0 : index
    %12 = vector.load %arg5[%c0_9, %c0_10] : memref<1x128xf32, #tpu.memory_space<vmem>>, vector<1x128xf32>
    %13 = vector.broadcast %12 : vector<1x128xf32> to vector<2x128xf32>
    %14 = arith.addf %11, %13 : vector<2x128xf32>
    %cst_11 = arith.constant 0.000000e+00 : f32
    %15 = vector.broadcast %cst_11 : f32 to vector<2x128xf32>
    %16 = arith.maximumf %14, %15 : vector<2x128xf32>
    %17 = arith.truncf %16 : vector<2x128xf32> to vector<2x128xbf16>
    %c0_12 = arith.constant 0 : index
    %c0_13 = arith.constant 0 : index
    %18 = vector.load %arg6[%c0_12, %c0_13] : memref<128x128xbf16, #tpu.memory_space<vmem>>, vector<128x128xbf16>
    %cst_14 = arith.constant dense<0.000000e+00> : vector<2x128xf32>
    %19 = tpu.matmul %17, %18, %cst_14 {dimension_numbers = #tpu.dot_dimension_numbers<[1], [0], [0], [1], [0, 0, 1, 1], [], []>} : vector<2x128xbf16>, vector<128x128xbf16>, vector<2x128xf32> -> vector<2x128xf32>
    %c0_15 = arith.constant 0 : index
    %c0_16 = arith.constant 0 : index
    %20 = vector.load %arg7[%c0_15, %c0_16] : memref<1x128xf32, #tpu.memory_space<vmem>>, vector<1x128xf32>
    %21 = vector.broadcast %20 : vector<1x128xf32> to vector<2x128xf32>
    %22 = arith.addf %19, %21 : vector<2x128xf32>
    %c0_17 = arith.constant 0 : index
    %c0_18 = arith.constant 0 : index
    %23 = vector.load %arg8[%c0_17, %c0_18] : memref<2x128xf32, #tpu.memory_space<vmem>>, vector<2x128xf32>
    tpu.vector_store %arg8[%c0_17, %c0_18], %22 {strides = array<i32>} : memref<2x128xf32, #tpu.memory_space<vmem>>, vector<2x128xf32>,
    return
  }
  func.func @transform_0(%arg0: i32) -> (i32, i32) {
    %c0_i32 = arith.constant 0 : i32
    %c0_i32_0 = arith.constant 0 : i32
    return %arg0, %c0_i32 : i32, i32
  }
  func.func @transform_1(%arg0: i32) -> (i32, i32) {
    %c0_i32 = arith.constant 0 : i32
    %c0_i32_0 = arith.constant 0 : i32
    %c0_i32_1 = arith.constant 0 : i32
    return %c0_i32, %c0_i32_0 : i32, i32
  }
  func.func @transform_2(%arg0: i32) -> (i32, i32) {
    %c0_i32 = arith.constant 0 : i32
    %c0_i32_0 = arith.constant 0 : i32
    %c0_i32_1 = arith.constant 0 : i32
    return %c0_i32, %c0_i32_0 : i32, i32
  }
  func.func @transform_3(%arg0: i32) -> (i32, i32) {
    %c0_i32 = arith.constant 0 : i32
    %c0_i32_0 = arith.constant 0 : i32
    %c0_i32_1 = arith.constant 0 : i32
    return %c0_i32, %c0_i32_0 : i32, i32
  }
  func.func @transform_4(%arg0: i32) -> (i32, i32) {
    %c0_i32 = arith.constant 0 : i32
    %c0_i32_0 = arith.constant 0 : i32
    %c0_i32_1 = arith.constant 0 : i32
    return %c0_i32, %c0_i32_0 : i32, i32
  }
  func.func @transform_5(%arg0: i32) -> (i32, i32) {
    %c0_i32 = arith.constant 0 : i32
    %c0_i32_0 = arith.constant 0 : i32
    %c0_i32_1 = arith.constant 0 : i32
    return %c0_i32, %c0_i32_0 : i32, i32
  }
  func.func @transform_6(%arg0: i32) -> (i32, i32) {
    %c0_i32 = arith.constant 0 : i32
    %c0_i32_0 = arith.constant 0 : i32
    %c0_i32_1 = arith.constant 0 : i32
    return %c0_i32, %c0_i32_0 : i32, i32
  }
  func.func @transform_7(%arg0: i32) -> (i32, i32) {
    %c0_i32 = arith.constant 0 : i32
    %c0_i32_0 = arith.constant 0 : i32
    return %arg0, %c0_i32 : i32, i32
  }
}

module attributes {stable_mosaic.version = 11 : i64} {
  func.func @_mlp_kernel(%arg0: i32, %arg1: memref<2x64xf32, #tpu.memory_space<vmem>>, %arg2: memref<64x128xbf16, #tpu.memory_space<vmem>>, %arg3: memref<1x128xf32, #tpu.memory_space<vmem>>, %arg4: memref<128x128xbf16, #tpu.memory_space<vmem>>, %arg5: memref<1x128xf32, #tpu.memory_space<vmem>>, %arg6: memref<128x128xbf16, #tpu.memory_space<vmem>>, %arg7: memref<1x128xf32, #tpu.memory_space<vmem>>, %arg8: memref<2x128xf32, #tpu.memory_space<vmem>>) attributes {dimension_semantics = [#tpu.dimension_semantics<parallel>], iteration_bounds = array<i64: 1>, scalar_prefetch = 0 : i64, scratch_operands = 0 : i64, tpu.core_type = #tpu.core_type<tc>, window_params = [{transform_indices = @transform_0, window_bounds = array<i64: 2, 64>}, {pipeline_mode = #tpu.pipeline_mode<synchronous>, transform_indices = @transform_1, window_bounds = array<i64: 64, 128>}, {pipeline_mode = #tpu.pipeline_mode<synchronous>, transform_indices = @transform_2, window_bounds = array<i64: 1, 128>}, {pipeline_mode = #tpu.pipeline_mode<synchronous>, transform_indices = @transform_3, window_bounds = array<i64: 128, 128>}, {pipeline_mode = #tpu.pipeline_mode<synchronous>, transform_indices = @transform_4, window_bounds = array<i64: 1, 128>}, {pipeline_mode = #tpu.pipeline_mode<synchronous>, transform_indices = @transform_5, window_bounds = array<i64: 128, 128>}, {pipeline_mode = #tpu.pipeline_mode<synchronous>, transform_indices = @transform_6, window_bounds = array<i64: 1, 128>}, {transform_indices = @transform_7, window_bounds = array<i64: 2, 128>}]} {
    %c0 = arith.constant 0 : index
    %c0_0 = arith.constant 0 : index
    %0 = vector.load %arg1[%c0, %c0_0] : memref<2x64xf32, #tpu.memory_space<vmem>>, vector<2x64xf32>
    %1 = arith.truncf %0 : vector<2x64xf32> to vector<2x64xbf16>
    %c0_1 = arith.constant 0 : index
    %c0_2 = arith.constant 0 : index
    %2 = vector.load %arg2[%c0_1, %c0_2] : memref<64x128xbf16, #tpu.memory_space<vmem>>, vector<64x128xbf16>
    %cst = arith.constant dense<0.000000e+00> : vector<2x128xf32>
    %3 = tpu.matmul %1, %2, %cst {dimension_numbers = #tpu.dot_dimension_numbers<[1], [0], [0], [1], [0, 0, 1, 1], [], []>} : vector<2x64xbf16>, vector<64x128xbf16>, vector<2x128xf32> -> vector<2x128xf32>
    %c0_3 = arith.constant 0 : index
    %c0_4 = arith.constant 0 : index
    %4 = vector.load %arg3[%c0_3, %c0_4] : memref<1x128xf32, #tpu.memory_space<vmem>>, vector<1x128xf32>
    %5 = vector.broadcast %4 : vector<1x128xf32> to vector<2x128xf32>
    %6 = arith.addf %3, %5 : vector<2x128xf32>
    %cst_5 = arith.constant 0.000000e+00 : f32
    %7 = vector.broadcast %cst_5 : f32 to vector<2x128xf32>
    %8 = arith.maximumf %6, %7 : vector<2x128xf32>
    %9 = arith.truncf %8 : vector<2x128xf32> to vector<2x128xbf16>
    %c0_6 = arith.constant 0 : index
    %c0_7 = arith.constant 0 : index
    %10 = vector.load %arg4[%c0_6, %c0_7] : memref<128x128xbf16, #tpu.memory_space<vmem>>, vector<128x128xbf16>
    %cst_8 = arith.constant dense<0.000000e+00> : vector<2x128xf32>
    %11 = tpu.matmul %9, %10, %cst_8 {dimension_numbers = #tpu.dot_dimension_numbers<[1], [0], [0], [1], [0, 0, 1, 1], [], []>} : vector<2x128xbf16>, vector<128x128xbf16>, vector<2x128xf32> -> vector<2x128xf32>
    %c0_9 = arith.constant 0 : index
    %c0_10 = arith.constant 0 : index
    %12 = vector.load %arg5[%c0_9, %c0_10] : memref<1x128xf32, #tpu.memory_space<vmem>>, vector<1x128xf32>
    %13 = vector.broadcast %12 : vector<1x128xf32> to vector<2x128xf32>
    %14 = arith.addf %11, %13 : vector<2x128xf32>
    %cst_11 = arith.constant 0.000000e+00 : f32
    %15 = vector.broadcast %cst_11 : f32 to vector<2x128xf32>
    %16 = arith.maximumf %14, %15 : vector<2x128xf32>
    %17 = arith.truncf %16 : vector<2x128xf32> to vector<2x128xbf16>
    %c0_12 = arith.constant 0 : index
    %c0_13 = arith.constant 0 : index
    %18 = vector.load %arg6[%c0_12, %c0_13] : memref<128x128xbf16, #tpu.memory_space<vmem>>, vector<128x128xbf16>
    %cst_14 = arith.constant dense<0.000000e+00> : vector<2x128xf32>
    %19 = tpu.matmul %17, %18, %cst_14 {dimension_numbers = #tpu.dot_dimension_numbers<[1], [0], [0], [1], [0, 0, 1, 1], [], []>} : vector<2x128xbf16>, vector<128x128xbf16>, vector<2x128xf32> -> vector<2x128xf32>
    %c0_15 = arith.constant 0 : index
    %c0_16 = arith.constant 0 : index
    %20 = vector.load %arg7[%c0_15, %c0_16] : memref<1x128xf32, #tpu.memory_space<vmem>>, vector<1x128xf32>
    %21 = vector.broadcast %20 : vector<1x128xf32> to vector<2x128xf32>
    %22 = arith.addf %19, %21 : vector<2x128xf32>
    %c0_17 = arith.constant 0 : index
    %c0_18 = arith.constant 0 : index
    %23 = vector.load %arg8[%c0_17, %c0_18] : memref<2x128xf32, #tpu.memory_space<vmem>>, vector<2x128xf32>
    tpu.vector_store %arg8[%c0_17, %c0_18], %22 {strides = array<i32>} : memref<2x128xf32, #tpu.memory_space<vmem>>, vector<2x128xf32>,
    return
  }
  func.func @transform_0(%arg0: i32) -> (i32, i32) {
    %c0_i32 = arith.constant 0 : i32
    %c0_i32_0 = arith.constant 0 : i32
    return %arg0, %c0_i32 : i32, i32
  }
  func.func @transform_1(%arg0: i32) -> (i32, i32) {
    %c0_i32 = arith.constant 0 : i32
    %c0_i32_0 = arith.constant 0 : i32
    %c0_i32_1 = arith.constant 0 : i32
    return %c0_i32, %c0_i32_0 : i32, i32
  }
  func.func @transform_2(%arg0: i32) -> (i32, i32) {
    %c0_i32 = arith.constant 0 : i32
    %c0_i32_0 = arith.constant 0 : i32
    %c0_i32_1 = arith.constant 0 : i32
    return %c0_i32, %c0_i32_0 : i32, i32
  }
  func.func @transform_3(%arg0: i32) -> (i32, i32) {
    %c0_i32 = arith.constant 0 : i32
    %c0_i32_0 = arith.constant 0 : i32
    %c0_i32_1 = arith.constant 0 : i32
    return %c0_i32, %c0_i32_0 : i32, i32
  }
  func.func @transform_4(%arg0: i32) -> (i32, i32) {
    %c0_i32 = arith.constant 0 : i32
    %c0_i32_0 = arith.constant 0 : i32
    %c0_i32_1 = arith.constant 0 : i32
    return %c0_i32, %c0_i32_0 : i32, i32
  }
  func.func @transform_5(%arg0: i32) -> (i32, i32) {
    %c0_i32 = arith.constant 0 : i32
    %c0_i32_0 = arith.constant 0 : i32
    %c0_i32_1 = arith.constant 0 : i32
    return %c0_i32, %c0_i32_0 : i32, i32
  }
  func.func @transform_6(%arg0: i32) -> (i32, i32) {
    %c0_i32 = arith.constant 0 : i32
    %c0_i32_0 = arith.constant 0 : i32
    %c0_i32_1 = arith.constant 0 : i32
    return %c0_i32, %c0_i32_0 : i32, i32
  }
  func.func @transform_7(%arg0: i32) -> (i32, i32) {
    %c0_i32 = arith.constant 0 : i32
    %c0_i32_0 = arith.constant 0 : i32
    return %arg0, %c0_i32 : i32, i32
  }
}

</mosaic_0001>

<bundles_post_ra>
// kernel: tpu_custom_call.1
= control target key start
LH: loop header
LB: loop body
LE: loop exit
PB: predicated region body
PF: predicated region fallthrough
CT: control target
= control target key end

     0   :  { %12 = vsyncpa [#allocation3], 0  ;;  %s640_s0 = inlined_call_operand.hbm [shape: f32[2,64], index: 0, kind: input, shape index: {}]   ;;  %s641_s1 = inlined_call_operand.hbm [shape: bf16[64,128], index: 1, kind: input, shape index: {}]   ;;  %s642_s2 = inlined_call_operand.vmem [shape: f32[1,128], index: 2, kind: input, shape index: {}]   ;;  %s643_s3 = inlined_call_operand.hbm [shape: bf16[128,128], index: 3, kind: input, shape index: {}]   ;;  %s644_s4 = inlined_call_operand.vmem [shape: f32[1,128], index: 4, kind: input, shape index: {}]   ;;  %s645_s5 = inlined_call_operand.hbm [shape: bf16[128,128], index: 5, kind: input, shape index: {}]   ;;  %s646_s6 = inlined_call_operand.vmem [shape: f32[1,128], index: 6, kind: input, shape index: {}]   ;;  %s647_s7 = inlined_call_operand.hbm [shape: f32[2,128], index: 7, kind: output, shape index: {}]  }
   0x1   :  { %13 = vsyncpa [#allocation6], 0 }
   0x2   :  { %14 = vsyncpa [#allocation9], 0  ;;  %s31_s26 = sshll.u32 %s641_s1, 4  ;;  %s32_s26 = int_to_ptr.hbm [resolvable:$true] %s31_s26 }
   0x3   :  { %15 = vsyncpa [#allocation4], 0  ;;  %s569_s27 = smov [#allocation5]   ;;  %s21_s8 = sshll.u32 %s640_s0, 4  ;;  %s22_s8 = int_to_ptr.hbm [resolvable:$true] %s21_s8 }
   0x4   :  { %s33_s28 = sshll.u32 %s569_s27, 4  ;;  %s570_s9 = smov 64   ;;  %s34_s28 = int_to_ptr.vmem [resolvable:$true] %s33_s28 }
   0x5   :  { %s571_s10 = smov 4   ;;  %s572_s11 = smov [#allocation2]  }
   0x6   :  { %39 = dma.hbm_to_vmem [thread:$0]  %s32_s26, 512, %s34_s28, [#allocation6], %s570_s9, %s570_s9, %s571_s10  }
   0x7   :  { %s23_s12 = sshll.u32 %s572_s11, 4  ;;  %s46_s15 = sshll.u32 %s643_s3, 4  ;;  %s24_s12 = int_to_ptr.vmem [resolvable:$true] %s23_s12  ;;  %s47_s15 = int_to_ptr.hbm [resolvable:$true] %s46_s15 }
   0x8   :  { %26 = dma.hbm_to_vmem [thread:$0]  %s22_s8, 32, %s24_s12, [#allocation3]  }
   0x9   :  { %s61_s17 = sshll.u32 %s645_s5, 4  ;;  %s573_s18 = smov [#allocation7]   ;;  %s62_s17 = int_to_ptr.hbm [resolvable:$true] %s61_s17 }
   0xa   :  { %s48_s19 = sshll.u32 %s573_s18, 4  ;;  %s574_s0 = smov [#allocation8]   ;;  %s49_s19 = int_to_ptr.vmem [resolvable:$true] %s48_s19 }
   0xb   :  { %54 = dma.hbm_to_vmem [thread:$0]  %s47_s15, 1024, %s49_s19, [#allocation6], %s570_s9, %s570_s9, %s571_s10  }
   0xc   :  { %s63_s20 = sshll.u32 %s574_s0, 4  ;;  %s64_s20 = int_to_ptr.vmem [resolvable:$true] %s63_s20 }
   0xd   :  { %69 = dma.hbm_to_vmem [thread:$0]  %s62_s17, 1024, %s64_s20, [#allocation9], %s570_s9, %s570_s9, %s571_s10  }
   0xe   :  { %561 = dma.done.wait [#allocation3], 32  }
   0xf   :  { %562 = vsyncadd [#allocation3], 4294967264 }
  0x10   :  { %563 = dma.done.wait [#allocation6], 1536  }
  0x11   :  { %564 = vsyncadd [#allocation6], 4294965760 }
  0x12   :  { %565 = dma.done.wait [#allocation9], 1024  }
  0x13   :  { %566 = vsyncadd [#allocation9], 4294966272  ;;  %v414_v0 = vld [vmem:[#allocation5 + $0x18] sm:$0xff]  ;;  %v413_v2 = vld [vmem:[#allocation5 + $0x10] sm:$0xff]  ;;  %vm127_vm0 = vcmask 523264   ;;  %s575_s24 = smov [#allocation10]  }
  0x14   :  { %v422_v1 = vld [vmem:[#allocation7 + $0x38] sm:$0xff]  ;;  %135 = vmatpush.bf16.msra.mxu0 %v414_v0  ;;  %v421_v3 = vld [vmem:[#allocation7 + $0x30] sm:$0xff]  ;;  %v412_v4 = vld [vmem:[#allocation5 + $0x8] sm:$0xff]  ;;  %s316_s25 = sshll.u32 %s575_s24, 4  ;;  %s318_s28 = sshll.u32 %s647_s7, 4  ;;  %s317_s25 = int_to_ptr.vmem [resolvable:$true] %s316_s25  ;;  %s319_s28 = int_to_ptr.hbm [resolvable:$true] %s318_s28 }
  0x15   :  { %214 = vmatpush.bf16.msra.mxu1 %v422_v1  ;;  %v420_v5 = vld [vmem:[#allocation7 + $0x28] sm:$0xff]  ;;  %v411_v6 = vld [vmem:[#allocation5] sm:$0xff]  ;;  %v89_v7 = vld [vmem:[#allocation2] sm:$0x3] }
  0x16   :  { %v419_v8 = vld [vmem:[#allocation7 + $0x20] sm:$0xff]  ;;  %v90_v9 = vpack.c.bf16 %v89_v7, %v89_v7  ;;  %v418_v10 = vld [vmem:[#allocation7 + $0x18] sm:$0xff]  ;;  %v417_v11 = vld [vmem:[#allocation7 + $0x10] sm:$0xff] }
  0x17   :  { %v416_v12 = vld [vmem:[#allocation7 + $0x8] sm:$0xff]  ;;  %v415_v13 = vld [vmem:[#allocation7] sm:$0xff]  ;;  %v430_v14 = vld [vmem:[#allocation8 + $0x38] sm:$0xff] }
  0x18   :  { %136 = vmatpush.bf16.msra.mxu0 %v413_v2  ;;  %297 = vmatpush.bf16.msra.mxu2 %v430_v14  ;;  %v429_v15 = vld [vmem:[#allocation8 + $0x30] sm:$0xff]  ;;  %v428_v16 = vld [vmem:[#allocation8 + $0x28] sm:$0xff]  ;;  %v427_v17 = vld [vmem:[#allocation8 + $0x20] sm:$0xff] }
  0x19   :  { %215 = vmatpush.bf16.msra.mxu1 %v421_v3  ;;  %v426_v18 = vld [vmem:[#allocation8 + $0x18] sm:$0xff]  ;;  %v425_v19 = vld [vmem:[#allocation8 + $0x10] sm:$0xff]  ;;  %v424_v26 = vld [vmem:[#allocation8 + $0x8] sm:$0xff] }
  0x1a   :  { %v438_v20 = vld [vmem:[%s642_s2] ss:$0 sm:$0xff]  ;;  %v423_v27 = vld [vmem:[#allocation8] sm:$0xff] }
  0x1b   :  { %v439_v28 = vld [vmem:[%s644_s4] ss:$0 sm:$0xff] }
  0x1c   :  { %137 = vmatpush.bf16.msra.mxu0 %v412_v4  ;;  %298 = vmatpush.bf16.msra.mxu2 %v429_v15  ;;  %v440_v34 = vld [vmem:[%s646_s6] ss:$0 sm:$0xff] }
  0x1d   :  { %216 = vmatpush.bf16.msra.mxu1 %v420_v5 }
  0x20   :  { %138 = vmatpush.bf16.msra.mxu0 %v411_v6  ;;  %299 = vmatpush.bf16.msra.mxu2 %v428_v16 }
  0x21   :  { %217 = vmatpush.bf16.msra.mxu1 %v419_v8 }
  0x23   :  { %346 = vmatmul.msk.bf16.vlgmr.msra.gmra.mxu0 %vm127_vm0, %v90_v9 }
  0x24   :  { %300 = vmatpush.bf16.msra.mxu2 %v427_v17 }
  0x25   :  { %218 = vmatpush.bf16.msra.mxu1 %v418_v10 }
  0x28   :  { %301 = vmatpush.bf16.msra.mxu2 %v426_v18 }
  0x29   :  { %219 = vmatpush.bf16.msra.mxu1 %v417_v11 }
  0x2c   :  { %302 = vmatpush.bf16.msra.mxu2 %v425_v19 }
  0x2d   :  { %220 = vmatpush.bf16.msra.mxu1 %v416_v12 }
  0x30   :  { %303 = vmatpush.bf16.msra.mxu2 %v424_v26 }
  0x31   :  { %221 = vmatpush.bf16.msra.mxu1 %v415_v13 }
  0x34   :  { %304 = vmatpush.bf16.msra.mxu2 %v423_v27 }
  0xa0   :  { %v140_v21 = vpop.f32.mrf.mxu0 }
  0xa1   :  { %v141_v22 = vadd.f32 %v438_v20, %v140_v21 }
  0xa3   :  { %v144_v23 = vmax.f32 %v141_v22, 0.0 }
  0xa5   :  { %v145_v24 = vpack.c.bf16 %v144_v23, %v144_v23 }
  0xa7   :  { %222 = vmatmul.bf16.vlgmr.msra.gmra.mxu1 %v145_v24 }
  0xa8   :  { %v142_v25 = vpop.f32.mrf.mxu0 }
 0x124   :  { %v223_v29 = vpop.f32.mrf.mxu1 }
 0x125   :  { %v224_v30 = vadd.f32 %v439_v28, %v223_v29 }
 0x127   :  { %v227_v31 = vmax.f32 %v224_v30, 0.0 }
 0x129   :  { %v228_v32 = vpack.c.bf16 %v227_v31, %v227_v31 }
 0x12b   :  { %305 = vmatmul.bf16.vlgmr.msra.gmra.mxu2 %v228_v32 }
 0x12c   :  { %v225_v33 = vpop.f32.mrf.mxu1 }
 0x1ae   :  { %v306_v35 = vpop.f32.mrf.mxu2 }
 0x1af   :  { %v307_v36 = vadd.f32 %v440_v34, %v306_v35 }
 0x1b1   :  { %310 = vst [vmem:[#allocation10] sm:$0x3] %v307_v36 }
 0x1b2   :  { %321 = dma.vmem_to_hbm [thread:$0]  %s317_s25, 32, %s319_s28, [#allocation4]  }
 0x1b6   :  { %v308_v37 = vpop.f32.mrf.mxu2 }
 0x1b7   :  { %567 = dma.done.wait [#allocation4], 32  }
 0x1b8   :  { %568 = vsyncadd [#allocation4], 4294967264 }
 0x1b9   :  { %326 = vsyncpa [#allocation3], 1 }
 0x1ba   :  { %327 = vsyncpa [#allocation6], 1 }
 0x1bb   :  { %328 = vsyncpa [#allocation9], 1 }
 0x1bc   :  { %329 = vsyncpa [#allocation4], 1 }

// kernel: tpu_custom_call.1
= control target key start
LH: loop header
LB: loop body
LE: loop exit
PB: predicated region body
PF: predicated region fallthrough
CT: control target
= control target key end

     0   :  { %12 = vsyncpa [#allocation3], 0  ;;  %s640_s0 = inlined_call_operand.hbm [shape: f32[2,64], index: 0, kind: input, shape index: {}]   ;;  %s641_s1 = inlined_call_operand.hbm [shape: bf16[64,128], index: 1, kind: input, shape index: {}]   ;;  %s642_s2 = inlined_call_operand.vmem [shape: f32[1,128], index: 2, kind: input, shape index: {}]   ;;  %s643_s3 = inlined_call_operand.hbm [shape: bf16[128,128], index: 3, kind: input, shape index: {}]   ;;  %s644_s4 = inlined_call_operand.vmem [shape: f32[1,128], index: 4, kind: input, shape index: {}]   ;;  %s645_s5 = inlined_call_operand.hbm [shape: bf16[128,128], index: 5, kind: input, shape index: {}]   ;;  %s646_s6 = inlined_call_operand.vmem [shape: f32[1,128], index: 6, kind: input, shape index: {}]   ;;  %s647_s7 = inlined_call_operand.hbm [shape: f32[2,128], index: 7, kind: output, shape index: {}]  }
   0x1   :  { %13 = vsyncpa [#allocation6], 0 }
   0x2   :  { %14 = vsyncpa [#allocation9], 0  ;;  %s31_s26 = sshll.u32 %s641_s1, 4  ;;  %s32_s26 = int_to_ptr.hbm [resolvable:$true] %s31_s26 }
   0x3   :  { %15 = vsyncpa [#allocation4], 0  ;;  %s569_s27 = smov [#allocation5]   ;;  %s21_s8 = sshll.u32 %s640_s0, 4  ;;  %s22_s8 = int_to_ptr.hbm [resolvable:$true] %s21_s8 }
   0x4   :  { %s33_s28 = sshll.u32 %s569_s27, 4  ;;  %s570_s9 = smov 64   ;;  %s34_s28 = int_to_ptr.vmem [resolvable:$true] %s33_s28 }
   0x5   :  { %s571_s10 = smov 4   ;;  %s572_s11 = smov [#allocation2]  }
   0x6   :  { %39 = dma.hbm_to_vmem [thread:$0]  %s32_s26, 512, %s34_s28, [#allocation6], %s570_s9, %s570_s9, %s571_s10  }
   0x7   :  { %s23_s12 = sshll.u32 %s572_s11, 4  ;;  %s46_s15 = sshll.u32 %s643_s3, 4  ;;  %s24_s12 = int_to_ptr.vmem [resolvable:$true] %s23_s12  ;;  %s47_s15 = int_to_ptr.hbm [resolvable:$true] %s46_s15 }
   0x8   :  { %26 = dma.hbm_to_vmem [thread:$0]  %s22_s8, 32, %s24_s12, [#allocation3]  }
   0x9   :  { %s61_s17 = sshll.u32 %s645_s5, 4  ;;  %s573_s18 = smov [#allocation7]   ;;  %s62_s17 = int_to_ptr.hbm [resolvable:$true] %s61_s17 }
   0xa   :  { %s48_s19 = sshll.u32 %s573_s18, 4  ;;  %s574_s0 = smov [#allocation8]   ;;  %s49_s19 = int_to_ptr.vmem [resolvable:$true] %s48_s19 }
   0xb   :  { %54 = dma.hbm_to_vmem [thread:$0]  %s47_s15, 1024, %s49_s19, [#allocation6], %s570_s9, %s570_s9, %s571_s10  }
   0xc   :  { %s63_s20 = sshll.u32 %s574_s0, 4  ;;  %s64_s20 = int_to_ptr.vmem [resolvable:$true] %s63_s20 }
   0xd   :  { %69 = dma.hbm_to_vmem [thread:$0]  %s62_s17, 1024, %s64_s20, [#allocation9], %s570_s9, %s570_s9, %s571_s10  }
   0xe   :  { %561 = dma.done.wait [#allocation3], 32  }
   0xf   :  { %562 = vsyncadd [#allocation3], 4294967264 }
  0x10   :  { %563 = dma.done.wait [#allocation6], 1536  }
  0x11   :  { %564 = vsyncadd [#allocation6], 4294965760 }
  0x12   :  { %565 = dma.done.wait [#allocation9], 1024  }
  0x13   :  { %566 = vsyncadd [#allocation9], 4294966272  ;;  %v414_v0 = vld [vmem:[#allocation5 + $0x18] sm:$0xff]  ;;  %v413_v2 = vld [vmem:[#allocation5 + $0x10] sm:$0xff]  ;;  %vm127_vm0 = vcmask 523264   ;;  %s575_s24 = smov [#allocation10]  }
  0x14   :  { %v422_v1 = vld [vmem:[#allocation7 + $0x38] sm:$0xff]  ;;  %135 = vmatpush.bf16.msra.mxu0 %v414_v0  ;;  %v421_v3 = vld [vmem:[#allocation7 + $0x30] sm:$0xff]  ;;  %v412_v4 = vld [vmem:[#allocation5 + $0x8] sm:$0xff]  ;;  %s316_s25 = sshll.u32 %s575_s24, 4  ;;  %s318_s28 = sshll.u32 %s647_s7, 4  ;;  %s317_s25 = int_to_ptr.vmem [resolvable:$true] %s316_s25  ;;  %s319_s28 = int_to_ptr.hbm [resolvable:$true] %s318_s28 }
  0x15   :  { %214 = vmatpush.bf16.msra.mxu1 %v422_v1  ;;  %v420_v5 = vld [vmem:[#allocation7 + $0x28] sm:$0xff]  ;;  %v411_v6 = vld [vmem:[#allocation5] sm:$0xff]  ;;  %v89_v7 = vld [vmem:[#allocation2] sm:$0x3] }
  0x16   :  { %v419_v8 = vld [vmem:[#allocation7 + $0x20] sm:$0xff]  ;;  %v90_v9 = vpack.c.bf16 %v89_v7, %v89_v7  ;;  %v418_v10 = vld [vmem:[#allocation7 + $0x18] sm:$0xff]  ;;  %v417_v11 = vld [vmem:[#allocation7 + $0x10] sm:$0xff] }
  0x17   :  { %v416_v12 = vld [vmem:[#allocation7 + $0x8] sm:$0xff]  ;;  %v415_v13 = vld [vmem:[#allocation7] sm:$0xff]  ;;  %v430_v14 = vld [vmem:[#allocation8 + $0x38] sm:$0xff] }
  0x18   :  { %136 = vmatpush.bf16.msra.mxu0 %v413_v2  ;;  %297 = vmatpush.bf16.msra.mxu2 %v430_v14  ;;  %v429_v15 = vld [vmem:[#allocation8 + $0x30] sm:$0xff]  ;;  %v428_v16 = vld [vmem:[#allocation8 + $0x28] sm:$0xff]  ;;  %v427_v17 = vld [vmem:[#allocation8 + $0x20] sm:$0xff] }
  0x19   :  { %215 = vmatpush.bf16.msra.mxu1 %v421_v3  ;;  %v426_v18 = vld [vmem:[#allocation8 + $0x18] sm:$0xff]  ;;  %v425_v19 = vld [vmem:[#allocation8 + $0x10] sm:$0xff]  ;;  %v424_v26 = vld [vmem:[#allocation8 + $0x8] sm:$0xff] }
  0x1a   :  { %v438_v20 = vld [vmem:[%s642_s2] ss:$0 sm:$0xff]  ;;  %v423_v27 = vld [vmem:[#allocation8] sm:$0xff] }
  0x1b   :  { %v439_v28 = vld [vmem:[%s644_s4] ss:$0 sm:$0xff] }
  0x1c   :  { %137 = vmatpush.bf16.msra.mxu0 %v412_v4  ;;  %298 = vmatpush.bf16.msra.mxu2 %v429_v15  ;;  %v440_v34 = vld [vmem:[%s646_s6] ss:$0 sm:$0xff] }
  0x1d   :  { %216 = vmatpush.bf16.msra.mxu1 %v420_v5 }
  0x20   :  { %138 = vmatpush.bf16.msra.mxu0 %v411_v6  ;;  %299 = vmatpush.bf16.msra.mxu2 %v428_v16 }
  0x21   :  { %217 = vmatpush.bf16.msra.mxu1 %v419_v8 }
  0x23   :  { %346 = vmatmul.msk.bf16.vlgmr.msra.gmra.mxu0 %vm127_vm0, %v90_v9 }
  0x24   :  { %300 = vmatpush.bf16.msra.mxu2 %v427_v17 }
  0x25   :  { %218 = vmatpush.bf16.msra.mxu1 %v418_v10 }
  0x28   :  { %301 = vmatpush.bf16.msra.mxu2 %v426_v18 }
  0x29   :  { %219 = vmatpush.bf16.msra.mxu1 %v417_v11 }
  0x2c   :  { %302 = vmatpush.bf16.msra.mxu2 %v425_v19 }
  0x2d   :  { %220 = vmatpush.bf16.msra.mxu1 %v416_v12 }
  0x30   :  { %303 = vmatpush.bf16.msra.mxu2 %v424_v26 }
  0x31   :  { %221 = vmatpush.bf16.msra.mxu1 %v415_v13 }
  0x34   :  { %304 = vmatpush.bf16.msra.mxu2 %v423_v27 }
  0xa0   :  { %v140_v21 = vpop.f32.mrf.mxu0 }
  0xa1   :  { %v141_v22 = vadd.f32 %v438_v20, %v140_v21 }
  0xa3   :  { %v144_v23 = vmax.f32 %v141_v22, 0.0 }
  0xa5   :  { %v145_v24 = vpack.c.bf16 %v144_v23, %v144_v23 }
  0xa7   :  { %222 = vmatmul.bf16.vlgmr.msra.gmra.mxu1 %v145_v24 }
  0xa8   :  { %v142_v25 = vpop.f32.mrf.mxu0 }
 0x124   :  { %v223_v29 = vpop.f32.mrf.mxu1 }
 0x125   :  { %v224_v30 = vadd.f32 %v439_v28, %v223_v29 }
 0x127   :  { %v227_v31 = vmax.f32 %v224_v30, 0.0 }
 0x129   :  { %v228_v32 = vpack.c.bf16 %v227_v31, %v227_v31 }
 0x12b   :  { %305 = vmatmul.bf16.vlgmr.msra.gmra.mxu2 %v228_v32 }
 0x12c   :  { %v225_v33 = vpop.f32.mrf.mxu1 }
 0x1ae   :  { %v306_v35 = vpop.f32.mrf.mxu2 }
 0x1af   :  { %v307_v36 = vadd.f32 %v440_v34, %v306_v35 }
 0x1b1   :  { %310 = vst [vmem:[#allocation10] sm:$0x3] %v307_v36 }
 0x1b2   :  { %321 = dma.vmem_to_hbm [thread:$0]  %s317_s25, 32, %s319_s28, [#allocation4]  }
 0x1b6   :  { %v308_v37 = vpop.f32.mrf.mxu2 }
 0x1b7   :  { %567 = dma.done.wait [#allocation4], 32  }
 0x1b8   :  { %568 = vsyncadd [#allocation4], 4294967264 }
 0x1b9   :  { %326 = vsyncpa [#allocation3], 1 }
 0x1ba   :  { %327 = vsyncpa [#allocation6], 1 }
 0x1bb   :  { %328 = vsyncpa [#allocation9], 1 }
 0x1bc   :  { %329 = vsyncpa [#allocation4], 1 }

</bundles_post_ra>
